<compile_context>
chip_gen: v6e
topology: v6e:2x2x1
jax: 0.10.0
libtpu: 0.0.40
codegen_flags: <defaults>
</compile_context>

<pallas_src>
import jax
import jax.numpy as jnp
from jax.experimental import pallas as pl
from jax.experimental.pallas import tpu as pltpu

HIDDEN = 64
OUT = 1


def mlp_kernel(x_ref, w1_ref, b1_ref, w2_ref, b2_ref, o_ref):
    # x arrives as f32 (single HBM pass); cast to bf16 only for the MXU operand.
    x_bf16 = x_ref[...].astype(jnp.bfloat16)
    # fc1 on the MXU: bf16 operands, f32 accumulation.
    h = jnp.dot(x_bf16, w1_ref[...], preferred_element_type=jnp.float32)
    h = jnp.tanh(h + b1_ref[...])                        # (TB, 64) f32, VPU + EUP
    # fc2 (output width 1): VPU multiply + XLU lane reduction instead of an
    # almost-empty MXU matmul.  w2_ref is (1, 64) and broadcasts over rows.
    y = jnp.sum(h * w2_ref[...], axis=-1, keepdims=True) + b2_ref[0]
    o_ref[...] = jax.nn.sigmoid(y).astype(o_ref.dtype)


def _round_up(n, m):
    return ((n + m - 1) // m) * m


def _choose_tile_batch(B, F, *, x_tile_bytes=4 << 20):
    """Pick TB so one f32 x tile is ~x_tile_bytes.

    Big enough to be DMA-bound on every generation (>= ~1.1 MiB needed on v7x,
    less on v6e/v5e), small enough that the double-buffered x stream plus the
    resident w1 stay far below the v7x 64 MiB VMEM ceiling.
    """
    tb = x_tile_bytes // (F * 4)
    if tb >= 256:
        # Multiple of 256: covers bf16 (16,128) sublane packing and MXU rows.
        tb = (tb // 256) * 256
    else:
        # Very large F: smaller tile, still sublane-aligned.
        # TODO(synk): for F in the tens of thousands, add a K-axis grid over F
        # with an f32 accumulator scratch (pl.when init / finalize) instead of
        # shrinking TB back into the overhead-bound regime.
        tb = max(_round_up(tb, 8), 8)
    return min(tb, _round_up(B, 8))


def mlp_forward(x, w1, b1, w2, b2, *, core_parallel=False):
    """x: (B, F) f32.  w1: (F, 64) f32, b1: (1, 64), w2: (1, 64), b2: (1,)."""
    B, F = x.shape
    TB = _choose_tile_batch(B, F)
    grid = (pl.cdiv(B, TB),)

    # w1 is tiny relative to the x stream; casting it to bf16 in the wrapper is
    # a negligible one-time pass and halves its resident VMEM footprint.
    w1_bf16 = w1.astype(jnp.bfloat16)

    # Explicit VMEM budget (bytes): double-buffered f32 x tile, its in-kernel
    # bf16 copy, single-buffered bf16 w1, activations, padded output blocks.
    x_tile = TB * F * 4
    vmem_estimate = (2 * x_tile + x_tile // 2 + F * HIDDEN * 2
                     + TB * HIDDEN * 4 + 2 * TB * 128 * 4)
    vmem_limit = min(max(32 << 20, int(vmem_estimate * 3 // 2)), 48 << 20)

    # On v7x (2 TensorCores/chip) plain "parallel" has near-zero codegen effect;
    # pass core_parallel=True (with >= 2 grid steps) to shard the batch axis
    # across cores.  Default off for portability to single-core v5e/v6e.
    batch_sem = pltpu.CORE_PARALLEL if core_parallel else "parallel"

    return pl.pallas_call(
        mlp_kernel,
        out_shape=jax.ShapeDtypeStruct((B, OUT), x.dtype),
        grid=grid,
        in_specs=[
            # x: streamed / double-buffered (the only real HBM traffic).
            pl.BlockSpec((TB, F), lambda i: (i, 0)),
            # Grid-invariant operands: fetched once, single-buffered.
            pl.BlockSpec((F, HIDDEN), lambda i: (0, 0),
                         pipeline_mode=pl.Buffered(1)),
            pl.BlockSpec((1, HIDDEN), lambda i: (0, 0),
                         pipeline_mode=pl.Buffered(1)),
            pl.BlockSpec((1, HIDDEN), lambda i: (0, 0),
                         pipeline_mode=pl.Buffered(1)),
            # b2: scalar in SMEM.
            pl.BlockSpec(memory_space=pltpu.MemorySpace.SMEM),
        ],
        out_specs=pl.BlockSpec((TB, OUT), lambda i: (i, 0)),
        compiler_params=pltpu.CompilerParams(
            dimension_semantics=(batch_sem,),
            vmem_limit_bytes=vmem_limit),
    )(x, w1_bf16, b1, w2, b2)


def init_params(key, input_size):
    # Deterministic init mimicking nn.Linear's uniform(-1/sqrt(fan_in), 1/sqrt(fan_in)).
    k1, k2, k3, k4 = jax.random.split(key, 4)
    bound1 = 1.0 / (input_size ** 0.5)
    bound2 = 1.0 / (HIDDEN ** 0.5)
    w1 = jax.random.uniform(k1, (input_size, HIDDEN), jnp.float32, -bound1, bound1)
    b1 = jax.random.uniform(k2, (1, HIDDEN), jnp.float32, -bound1, bound1)
    # w2 keeps PyTorch's fc2.weight layout (out_features, in_features) = (1, 64).
    w2 = jax.random.uniform(k3, (1, HIDDEN), jnp.float32, -bound2, bound2)
    b2 = jax.random.uniform(k4, (1,), jnp.float32, -bound2, bound2)
    return w1, b1, w2, b2


if __name__ == "__main__":
    key = jax.random.PRNGKey(0)
    kx, kp = jax.random.split(key)

    batch, input_size = 8, 32
    x = jax.random.normal(kx, (batch, input_size), jnp.float32)
    w1, b1, w2, b2 = init_params(kp, input_size)

    out = jax.block_until_ready(mlp_forward(x, w1, b1, w2, b2))

    # Pure-JAX reference mirroring the in-kernel bf16 rounding of the fc1
    # matmul operands (intentional precision trade-off, ~1e-3 level).
    xb = x.astype(jnp.bfloat16).astype(jnp.float32)
    w1b = w1.astype(jnp.bfloat16).astype(jnp.float32)
    h = jnp.tanh(xb @ w1b + b1)
    ref = jax.nn.sigmoid(h @ w2.T + b2)

    assert out.shape == (batch, OUT)
    assert jnp.allclose(out, ref, atol=2e-3, rtol=2e-3), (out, ref)

    print("KERNEL_OK")
</pallas_src>

<mosaic_0001>
module attributes {stable_mosaic.version = 11 : i64} {
  func.func @mlp_kernel(%arg0: i32, %arg1: memref<8x32xf32, #tpu.memory_space<vmem>>, %arg2: memref<32x64xbf16, #tpu.memory_space<vmem>>, %arg3: memref<1x64xf32, #tpu.memory_space<vmem>>, %arg4: memref<1x64xf32, #tpu.memory_space<vmem>>, %arg5: memref<1xf32, #tpu.memory_space<smem>>, %arg6: memref<8x1xf32, #tpu.memory_space<vmem>>) attributes {dimension_semantics = [#tpu.dimension_semantics<parallel>], iteration_bounds = array<i64: 1>, scalar_prefetch = 0 : i64, scratch_operands = 0 : i64, tpu.core_type = #tpu.core_type<tc>, window_params = [{transform_indices = @transform_0, window_bounds = array<i64: 8, 32>}, {pipeline_mode = #tpu.pipeline_mode<synchronous>, transform_indices = @transform_1, window_bounds = array<i64: 32, 64>}, {pipeline_mode = #tpu.pipeline_mode<synchronous>, transform_indices = @transform_2, window_bounds = array<i64: 1, 64>}, {pipeline_mode = #tpu.pipeline_mode<synchronous>, transform_indices = @transform_3, window_bounds = array<i64: 1, 64>}, {transform_indices = @transform_4, window_bounds = array<i64: 1>}, {transform_indices = @transform_5, window_bounds = array<i64: 8, 1>}]} {
    %c0 = arith.constant 0 : index
    %c0_0 = arith.constant 0 : index
    %0 = vector.load %arg1[%c0, %c0_0] : memref<8x32xf32, #tpu.memory_space<vmem>>, vector<8x32xf32>
    %1 = arith.truncf %0 : vector<8x32xf32> to vector<8x32xbf16>
    %c0_1 = arith.constant 0 : index
    %c0_2 = arith.constant 0 : index
    %2 = vector.load %arg2[%c0_1, %c0_2] : memref<32x64xbf16, #tpu.memory_space<vmem>>, vector<32x64xbf16>
    %cst = arith.constant dense<0.000000e+00> : vector<8x64xf32>
    %3 = tpu.matmul %1, %2, %cst {dimension_numbers = #tpu.dot_dimension_numbers<[1], [0], [0], [1], [0, 0, 1, 1], [], []>} : vector<8x32xbf16>, vector<32x64xbf16>, vector<8x64xf32> -> vector<8x64xf32>
    %c0_3 = arith.constant 0 : index
    %c0_4 = arith.constant 0 : index
    %4 = vector.load %arg3[%c0_3, %c0_4] : memref<1x64xf32, #tpu.memory_space<vmem>>, vector<1x64xf32>
    %5 = vector.broadcast %4 : vector<1x64xf32> to vector<8x64xf32>
    %6 = arith.addf %3, %5 : vector<8x64xf32>
    %7 = math.tanh %6 : vector<8x64xf32>
    %c0_5 = arith.constant 0 : index
    %c0_6 = arith.constant 0 : index
    %8 = vector.load %arg4[%c0_5, %c0_6] : memref<1x64xf32, #tpu.memory_space<vmem>>, vector<1x64xf32>
    %9 = vector.broadcast %8 : vector<1x64xf32> to vector<8x64xf32>
    %10 = arith.mulf %7, %9 : vector<8x64xf32>
    %cst_7 = arith.constant dense<0.000000e+00> : vector<8xf32>
    %11 = vector.multi_reduction <add>, %10, %cst_7 [1] : vector<8x64xf32> to vector<8xf32>
    %12 = vector.shape_cast %11 : vector<8xf32> to vector<8x1xf32>
    %c0_8 = arith.constant 0 : index
    %13 = memref.load %arg5[%c0_8] : memref<1xf32, #tpu.memory_space<smem>>
    %14 = vector.broadcast %13 : f32 to vector<8x1xf32>
    %15 = arith.addf %12, %14 : vector<8x1xf32>
    %16 = arith.negf %15 : vector<8x1xf32>
    %17 = math.exp %16 : vector<8x1xf32>
    %cst_9 = arith.constant 1.000000e+00 : f32
    %18 = vector.broadcast %cst_9 : f32 to vector<8x1xf32>
    %19 = arith.addf %18, %17 : vector<8x1xf32>
    %20 = arith.divf %18, %19 : vector<8x1xf32>
    %c0_10 = arith.constant 0 : index
    %c0_11 = arith.constant 0 : index
    %21 = vector.load %arg6[%c0_10, %c0_11] : memref<8x1xf32, #tpu.memory_space<vmem>>, vector<8x1xf32>
    tpu.vector_store %arg6[%c0_10, %c0_11], %20 {strides = array<i32>} : memref<8x1xf32, #tpu.memory_space<vmem>>, vector<8x1xf32>,
    return
  }
  func.func @transform_0(%arg0: i32) -> (i32, i32) {
    %c0_i32 = arith.constant 0 : i32
    %c0_i32_0 = arith.constant 0 : i32
    return %arg0, %c0_i32 : i32, i32
  }
  func.func @transform_1(%arg0: i32) -> (i32, i32) {
    %c0_i32 = arith.constant 0 : i32
    %c0_i32_0 = arith.constant 0 : i32
    %c0_i32_1 = arith.constant 0 : i32
    return %c0_i32, %c0_i32_0 : i32, i32
  }
  func.func @transform_2(%arg0: i32) -> (i32, i32) {
    %c0_i32 = arith.constant 0 : i32
    %c0_i32_0 = arith.constant 0 : i32
    %c0_i32_1 = arith.constant 0 : i32
    return %c0_i32, %c0_i32_0 : i32, i32
  }
  func.func @transform_3(%arg0: i32) -> (i32, i32) {
    %c0_i32 = arith.constant 0 : i32
    %c0_i32_0 = arith.constant 0 : i32
    %c0_i32_1 = arith.constant 0 : i32
    return %c0_i32, %c0_i32_0 : i32, i32
  }
  func.func @transform_4(%arg0: i32) -> i32 {
    %c0_i32 = arith.constant 0 : i32
    %c0_i32_0 = arith.constant 0 : i32
    return %c0_i32 : i32
  }
  func.func @transform_5(%arg0: i32) -> (i32, i32) {
    %c0_i32 = arith.constant 0 : i32
    %c0_i32_0 = arith.constant 0 : i32
    return %arg0, %c0_i32 : i32, i32
  }
}

</mosaic_0001>

<bundles_post_ra>
// kernel: tpu_custom_call.1
= control target key start
LH: loop header
LB: loop body
LE: loop exit
PB: predicated region body
PF: predicated region fallthrough
CT: control target
= control target key end

     0   :  { %11 = vsyncpa [#allocation4], 0  ;;  %s276_s0 = inlined_call_operand.hbm [shape: f32[8,32], index: 0, kind: input, shape index: {}]   ;;  %s277_s1 = inlined_call_operand.hbm [shape: bf16[32,64], index: 1, kind: input, shape index: {}]   ;;  %s278_s2 = inlined_call_operand.vmem [shape: f32[1,64], index: 2, kind: input, shape index: {}]   ;;  %s279_s3 = inlined_call_operand.vmem [shape: f32[1,64], index: 3, kind: input, shape index: {}]   ;;  %s280_s4 = inlined_call_operand.<no memory space> [shape: f32[1], index: 4, kind: input, shape index: {}]   ;;  %s281_s5 = inlined_call_operand.vmem [shape: f32[8,1], index: 5, kind: output, shape index: {}]  }
   0x1   :  { %12 = vsyncpa [#allocation6], 0  ;;  %s222_s18 = smov [#allocation3]   ;;  %s223_s20 = smov [#allocation5]  }
   0x2   :  { %s19_s19 = sshll.u32 %s222_s18, 4  ;;  %s28_s21 = sshll.u32 %s223_s20, 4  ;;  %s20_s19 = int_to_ptr.vmem [resolvable:$true] %s19_s19  ;;  %s29_s21 = int_to_ptr.vmem [resolvable:$true] %s28_s21 }
   0x3   :  { %s186_s22 = scalar_lea.vmem %s20_s19, 128  ;;  %p191_p1 = scmp.lt.s32.totalorder %s20_s19, %s20_s19 }
   0x4   :  { %p187_p0 = scmp.ne.s32.totalorder %s20_s19, %s186_s22  ;;  %p192_p2 = scmp.lt.s32.totalorder %s186_s22, %s186_s22 }
   0x6   :  { %p193_p3 = por %p192_p2, %p191_p1 }
   0x8   :  { %p194_p4 = pnand %p193_p3, %p187_p0 }
   0xa   :  { %197 = shalt.err (!%p194_p4)
}
   0xb   :  { %22 = dma.hbm_to_vmem [thread:$0]  %s276_s0, 128, %s20_s19, [#allocation4]  }
   0xc   :  { %s206_s25 = scalar_lea.vmem %s29_s21, 256  ;;  %p211_p6 = scmp.lt.s32.totalorder %s29_s21, %s29_s21 }
   0xd   :  { %p207_p5 = scmp.ne.s32.totalorder %s29_s21, %s206_s25  ;;  %p212_p7 = scmp.lt.s32.totalorder %s206_s25, %s206_s25 }
   0xf   :  { %p213_p8 = por %p212_p7, %p211_p6 }
  0x11   :  { %p214_p9 = pnand %p213_p8, %p207_p5 }
  0x13   :  { %217 = shalt.err (!%p214_p9)
}
  0x14   :  { %s224_s26 = smov 64   ;;  %s225_s27 = smov 4  }
  0x15   :  { %34 = dma.hbm_to_vmem [thread:$0]  %s277_s1, 256, %s29_s21, [#allocation6], %s224_s26, %s224_s26, %s225_s27  }
  0x16   :  { %218 = dma.done.wait [#allocation4], 128  }
  0x17   :  { %219 = vsyncadd [#allocation4], 4294967168 }
  0x18   :  { %220 = dma.done.wait [#allocation6], 256  }
  0x19   :  { %221 = vsyncadd [#allocation6], 4294967040  ;;  %v226_v0 = vmov 0.0   ;;  %vm227_vm0 = vmmov 0   ;;  %v170_v1 = vld [vmem:[#allocation5 + $0x8] sm:$0xff]   ;;  %v171_v2 = vld [vmem:[#allocation5] sm:$0xff]   ;;  %v131_v15 = vstv %s280_s4 }
  0x1a   :  { %156 = vmatprep.subr.bf16.mxu0 %v226_v0  ;;  %160 = vmatprep.mubr.msk.bf16.mxu0 %vm227_vm0, %v226_v0  ;;  %v48_v3 = vld [vmem:[#allocation3] sm:$0xff]  ;;  %vm73_vm1 = vcmask 261120   ;;  %vm126_vm2 = vcmask 523264   ;;  %vm139_vm3 = vcmask 7168  }
  0x1b   :  { %157 = vmatpush3.bf16.msra.mxu0 %v170_v1  ;;  %v49_v4 = vpack.c.bf16 %v48_v3, %v48_v3  ;;  %v147_v5 = vld [vmem:[%s278_s2] ss:$0 sm:$0xff] }
  0x1c   :  { %158 = vmatprep.subr.bf16.mxu0 %v226_v0  ;;  %v151_v11 = vld [vmem:[%s279_s3] ss:$0 sm:$0xff] }
  0x1f   :  { %159 = vmatpush3.bf16.msra.mxu0 %v171_v2 }
  0x22   :  { %161 = vmatmul.mubr.msk.bf16.vlgmr.msra.gmra.mxu0 %vm73_vm1, %v49_v4 }
  0xe2   :  { %v111_v6 = vpop.f32.mrf.mxu0 }
  0xe3   :  { %v112_v7 = vadd.f32 %v147_v5, %v111_v6 }
  0xe4   :  { %v162_v8 = vpop.f32.mrf.mxu0 }
  0xe5   :  { %172 = vtanh.f32 %v112_v7 }
  0xe6   :  { %v114_v9 = vpop.f32.mrf.mxu0 }
  0xe8   :  { %v163_v10 = vpop.f32.mrf.mxu0 }
  0xf2   :  { %v173_v12 = vpop.eup %172 }
  0xf3   :  { %v125_v13 = vmul.f32 %v173_v12, %v151_v11 }
  0xf5   :  { %v127_v14 = vsel %vm126_vm2, %v125_v13, 0.0 }
  0xf6   :  { %128 = vadd.xlane.f32.xlu0 %v127_v14 }
 0x17f   :  { %v129_v16 = vpop.xlane.xlu0 %128 }
 0x180   :  { %v132_v17 = vadd.f32 %v131_v15, %v129_v16 }
 0x182   :  { %v152_v18 = vmul.f32 -1.442695, %v132_v17 }
 0x184   :  { %174 = vpow2.f32 %v152_v18 }
 0x191   :  { %v175_v19 = vpop.eup %174 }
 0x192   :  { %v136_v20 = vadd.f32 1.0, %v175_v19 }
 0x194   :  { %176 = vrcp.f32 %v136_v20 }
 0x1a1   :  { %v177_v21 = vpop.eup %176 }
 0x1a2   :  { %140 = vst.msk [vmem:[%s281_s5] sm:$0xff] %vm139_vm3, %v177_v21 }
 0x1a3   :  { %145 = vsyncpa [#allocation4], 1 }
 0x1a4   :  { %146 = vsyncpa [#allocation6], 1 }

</bundles_post_ra>
